<compile_context>
chip_gen: v6e
topology: v6e:2x2x1
jax: 0.10.0
libtpu: 0.0.40
codegen_flags: <defaults>
</compile_context>

<pallas_src>
import math
from functools import partial

import jax
import jax.numpy as jnp
from jax.experimental import pallas as pl
from jax.experimental.pallas import tpu as pltpu


def auto_num_groups(channels):
    # Matches Normalize(): largest group count in [32,16,8,4,2,1] dividing C.
    for g in (32, 16, 8, 4, 2, 1):
        if channels % g == 0:
            return g
    return 1


# --------------------------------------------------------------- the kernel --

def _attention_block_kernel(x_ref, mavg_ref, gamma_ref, beta_ref,
                            wqkv_ref, bqkv_ref, wproj_ref, bproj_ref,
                            o_ref, a_scratch, *, num_heads, eps, inv_t):
    f32, bf16 = jnp.float32, jnp.bfloat16

    x = x_ref[0].astype(f32)                                  # (T, C) channels-last
    T, C = x.shape
    ch = C // num_heads

    # ----- GroupNorm (eps=1e-6) ----------------------------------------------
    # Reduce over T first (per-channel stats), then pool channel groups with a
    # tiny (1,C)@(C,C) matmul against the constant group-averaging matrix.
    mean_ch = jnp.sum(x, axis=0, keepdims=True) * inv_t                      # (1, C)
    mean = jnp.dot(mean_ch, mavg_ref[...], preferred_element_type=f32)       # (1, C)
    d = x - mean
    var_ch = jnp.sum(d * d, axis=0, keepdims=True) * inv_t                   # (1, C)
    var = jnp.dot(var_ch, mavg_ref[...], preferred_element_type=f32)         # (1, C)
    h = d * jax.lax.rsqrt(var + eps)
    h = (h * gamma_ref[...] + beta_ref[...]).astype(bf16)                    # (T, C)

    # ----- 1x1 qkv conv == (T, C) @ (C, 3C); bf16 MXU operands, f32 acc ------
    # The attention scale is already folded into the q columns of wqkv / bqkv.
    qkv = jnp.dot(h, wqkv_ref[...], preferred_element_type=f32) + bqkv_ref[...]
    qkv = qkv.astype(bf16)                                                    # (T, 3C)

    # ----- QKVAttentionLegacy per head ----------------------------------------
    # Head outputs go into a bf16 (T, C) scratch at their column slice; the
    # projection is then a single full-depth (T, C) @ (C, C) matmul.
    dn_nt = (((1,), (1,)), ((), ()))                                          # q @ k^T
    for head in range(num_heads):
        base = head * 3 * ch
        q = qkv[:, base:base + ch]                                            # (T, ch)
        k = qkv[:, base + ch:base + 2 * ch]                                   # (T, ch)
        v = qkv[:, base + 2 * ch:base + 3 * ch]                               # (T, ch)
        w = jax.lax.dot_general(q, k, dn_nt, preferred_element_type=f32)      # (T, T)
        w = jnp.exp(w - jnp.max(w, axis=-1, keepdims=True))
        w = w * pl.reciprocal(jnp.sum(w, axis=-1, keepdims=True), approx=True)
        a = jnp.dot(w.astype(bf16), v, preferred_element_type=f32)            # (T, ch)
        a_scratch[:, head * ch:(head + 1) * ch] = a.astype(bf16)

    hp = jnp.dot(a_scratch[...], wproj_ref[...], preferred_element_type=f32)  # (T, C)
    hp = hp + bproj_ref[...]

    # ----- residual ------------------------------------------------------------
    o_ref[0] = (x + hp).astype(o_ref.dtype)                                   # (T, C)


# ------------------------------------------------------------------ wrapper --

def attention_block(x, params):
    """x: (B, C, T) -> (B, C, T). Entire AttentionBlock fused in one pallas_call."""
    B, C, T = x.shape
    H = params['num_heads']
    G = params['num_groups']
    assert C % H == 0 and C % G == 0
    ch = C // H
    cg = C // G

    # Channels-last inside the kernel: one layout transpose in the wrapper,
    # lane dim = C for every matmul and for the output stores.
    x_tc = jnp.transpose(x, (0, 2, 1))                                  # (B, T, C)

    # Constant group-averaging matrix: M[i, j] = [group(i)==group(j)] / cg.
    gid = jnp.arange(C, dtype=jnp.int32) // cg
    mavg = (gid[:, None] == gid[None, :]).astype(jnp.float32) / float(cg)

    gamma = params['gamma'].reshape(1, C).astype(jnp.float32)
    beta = params['beta'].reshape(1, C).astype(jnp.float32)

    # Fold the attention scale (1/sqrt(ch) == scale*scale) into the q rows of
    # the qkv weight / bias — a one-time constant transform.
    out_idx = jnp.arange(3 * C)
    is_q = (out_idx % (3 * ch)) < ch
    scale_vec = jnp.where(is_q, 1.0 / math.sqrt(ch), 1.0).astype(jnp.float32)
    wqkv = (params['w_qkv'][:, :, 0] * scale_vec[:, None]).T.astype(jnp.bfloat16)  # (C, 3C)
    bqkv = (params['b_qkv'] * scale_vec).reshape(1, 3 * C).astype(jnp.float32)
    wproj = params['w_proj'][:, :, 0].T.astype(jnp.bfloat16)                        # (C, C)
    bproj = params['b_proj'].reshape(1, C).astype(jnp.float32)

    cost = pl.CostEstimate(
        flops=int(B * (8 * T * C * C + 4 * T * T * C)),
        transcendentals=int(B * H * T * T),
        bytes_accessed=int(2 * B * T * C * 4 + 4 * C * C * 2 + 8 * C * 4))

    kernel = partial(_attention_block_kernel,
                     num_heads=H, eps=1e-6, inv_t=1.0 / float(T))

    out_tc = pl.pallas_call(
        kernel,
        out_shape=jax.ShapeDtypeStruct((B, T, C), x.dtype),
        grid=(B,),
        in_specs=[
            pl.BlockSpec((1, T, C), lambda b: (b, 0, 0)),    # x, one batch/step
            pl.BlockSpec((C, C), lambda b: (0, 0)),          # group-avg matrix
            pl.BlockSpec((1, C), lambda b: (0, 0)),          # gamma
            pl.BlockSpec((1, C), lambda b: (0, 0)),          # beta
            pl.BlockSpec((C, 3 * C), lambda b: (0, 0)),      # qkv weight (bf16)
            pl.BlockSpec((1, 3 * C), lambda b: (0, 0)),      # qkv bias
            pl.BlockSpec((C, C), lambda b: (0, 0)),          # proj weight (bf16)
            pl.BlockSpec((1, C), lambda b: (0, 0)),          # proj bias
        ],
        out_specs=pl.BlockSpec((1, T, C), lambda b: (b, 0, 0)),
        scratch_shapes=[pltpu.VMEM((T, C), jnp.bfloat16)],   # per-head outputs
        compiler_params=pltpu.CompilerParams(
            dimension_semantics=("parallel",),               # batch across TCs
            vmem_limit_bytes=64 * 1024 * 1024),
        cost_estimate=cost,
    )(x_tc, mavg, gamma, beta, wqkv, bqkv, wproj, bproj)

    return jnp.transpose(out_tc, (0, 2, 1))                  # back to (B, C, T)


def attention_block_forward(x, params):
    """Matches AttentionBlock.forward: (b, c, *spatial) -> same shape."""
    b, c, *spatial = x.shape
    h = attention_block(x.reshape(b, c, -1), params)
    return h.reshape(b, c, *spatial)


# ---------------------------------------------------- params + JAX reference --

def init_attention_block(key, channels, num_heads):
    k1, k2, k3, k4 = jax.random.split(key, 4)
    # GroupNorm affine init (weight=1, bias=0) matches nn.GroupNorm defaults.
    return {
        'num_heads': num_heads,
        'num_groups': auto_num_groups(channels),
        'gamma': jnp.ones((channels,), jnp.float32),
        'beta': jnp.zeros((channels,), jnp.float32),
        'w_qkv': 0.1 * jax.random.normal(k1, (3 * channels, channels, 1), jnp.float32),
        'b_qkv': 0.1 * jax.random.normal(k2, (3 * channels,), jnp.float32),
        # TODO(synk): reference zero-inits proj_out (zero_module); random init
        # used here so the attention path is numerically exercised.
        'w_proj': 0.1 * jax.random.normal(k3, (channels, channels, 1), jnp.float32),
        'b_proj': 0.1 * jax.random.normal(k4, (channels,), jnp.float32),
    }


def attention_block_ref(x, params):
    """Pure-JAX f32 reference implementing the exact PyTorch module math."""
    B, C, T = x.shape
    G, H = params['num_groups'], params['num_heads']
    cg, ch = C // G, C // H
    xg = x.reshape(B, G, cg * T).astype(jnp.float32)
    mean = xg.mean(axis=2, keepdims=True)
    var = ((xg - mean) ** 2).mean(axis=2, keepdims=True)
    xn = ((xg - mean) / jnp.sqrt(var + 1e-6)).reshape(B, C, T)
    h = xn * params['gamma'][None, :, None] + params['beta'][None, :, None]
    qkv = jnp.einsum('oc,bct->bot', params['w_qkv'][:, :, 0], h) \
        + params['b_qkv'][None, :, None]
    qkv = qkv.reshape(B * H, 3 * ch, T)
    q, k, v = qkv[:, :ch], qkv[:, ch:2 * ch], qkv[:, 2 * ch:]
    scale = 1.0 / math.sqrt(math.sqrt(ch))
    w = jnp.einsum('bct,bcs->bts', q * scale, k * scale)
    w = jax.nn.softmax(w, axis=-1)
    a = jnp.einsum('bts,bcs->bct', w, v).reshape(B, C, T)
    hp = jnp.einsum('oc,bct->bot', params['w_proj'][:, :, 0], a) \
        + params['b_proj'][None, :, None]
    return x + hp


# --------------------------------------------------------------------- main --

if __name__ == "__main__":
    B, C, T = 2, 64, 16          # batch=2, channels=64 (32 groups, 4 heads), len 16
    num_heads = 4

    key = jax.random.PRNGKey(0)
    kx, kp = jax.random.split(key)
    x = jax.random.normal(kx, (B, C, T), jnp.float32)
    params = init_attention_block(kp, C, num_heads)

    out = attention_block_forward(x, params)
    out = jax.block_until_ready(out)

    assert out.shape == (B, C, T)
    assert bool(jnp.all(jnp.isfinite(out)))
    ref = attention_block_ref(x, params)
    max_err = float(jnp.max(jnp.abs(out - ref)))
    # bf16 MXU operands + approx reciprocal in the softmax -> loose tolerance.
    assert max_err < 5e-2, f"max abs err {max_err}"
    print("KERNEL_OK")
</pallas_src>

<mosaic_0001>
module attributes {stable_mosaic.version = 11 : i64} {
  func.func @_attention_block_kernel(%arg0: i32, %arg1: memref<1x16x64xf32, #tpu.memory_space<vmem>>, %arg2: memref<64x64xf32, #tpu.memory_space<vmem>>, %arg3: memref<1x64xf32, #tpu.memory_space<vmem>>, %arg4: memref<1x64xf32, #tpu.memory_space<vmem>>, %arg5: memref<64x192xbf16, #tpu.memory_space<vmem>>, %arg6: memref<1x192xf32, #tpu.memory_space<vmem>>, %arg7: memref<64x64xbf16, #tpu.memory_space<vmem>>, %arg8: memref<1x64xf32, #tpu.memory_space<vmem>>, %arg9: memref<1x16x64xf32, #tpu.memory_space<vmem>>, %arg10: memref<16x64xbf16, #tpu.memory_space<vmem>>) attributes {dimension_semantics = [#tpu.dimension_semantics<parallel>], iteration_bounds = array<i64: 2>, scalar_prefetch = 0 : i64, scratch_operands = 1 : i64, tpu.core_type = #tpu.core_type<tc>, window_params = [{transform_indices = @transform_0, window_bounds = array<i64: 1, 16, 64>}, {pipeline_mode = #tpu.pipeline_mode<synchronous>, transform_indices = @transform_1, window_bounds = array<i64: 64, 64>}, {pipeline_mode = #tpu.pipeline_mode<synchronous>, transform_indices = @transform_2, window_bounds = array<i64: 1, 64>}, {pipeline_mode = #tpu.pipeline_mode<synchronous>, transform_indices = @transform_3, window_bounds = array<i64: 1, 64>}, {pipeline_mode = #tpu.pipeline_mode<synchronous>, transform_indices = @transform_4, window_bounds = array<i64: 64, 192>}, {pipeline_mode = #tpu.pipeline_mode<synchronous>, transform_indices = @transform_5, window_bounds = array<i64: 1, 192>}, {pipeline_mode = #tpu.pipeline_mode<synchronous>, transform_indices = @transform_6, window_bounds = array<i64: 64, 64>}, {pipeline_mode = #tpu.pipeline_mode<synchronous>, transform_indices = @transform_7, window_bounds = array<i64: 1, 64>}, {transform_indices = @transform_8, window_bounds = array<i64: 1, 16, 64>}]} {
    %c0 = arith.constant 0 : index
    %c0_0 = arith.constant 0 : index
    %c0_1 = arith.constant 0 : index
    %0 = vector.load %arg1[%c0, %c0_0, %c0_1] : memref<1x16x64xf32, #tpu.memory_space<vmem>>, vector<1x16x64xf32>
    %1 = vector.shape_cast %0 : vector<1x16x64xf32> to vector<16x64xf32>
    %cst = arith.constant dense<0.000000e+00> : vector<64xf32>
    %2 = vector.multi_reduction <add>, %1, %cst [0] : vector<16x64xf32> to vector<64xf32>
    %3 = vector.shape_cast %2 : vector<64xf32> to vector<1x64xf32>
    %cst_2 = arith.constant 6.250000e-02 : f32
    %4 = vector.broadcast %cst_2 : f32 to vector<1x64xf32>
    %5 = arith.mulf %3, %4 : vector<1x64xf32>
    %c0_3 = arith.constant 0 : index
    %c0_4 = arith.constant 0 : index
    %6 = vector.load %arg2[%c0_3, %c0_4] : memref<64x64xf32, #tpu.memory_space<vmem>>, vector<64x64xf32>
    %cst_5 = arith.constant dense<0.000000e+00> : vector<1x64xf32>
    %7 = tpu.matmul %5, %6, %cst_5 {dimension_numbers = #tpu.dot_dimension_numbers<[1], [0], [0], [1], [0, 0, 1, 1], [], []>} : vector<1x64xf32>, vector<64x64xf32>, vector<1x64xf32> -> vector<1x64xf32>
    %8 = vector.broadcast %7 : vector<1x64xf32> to vector<16x64xf32>
    %9 = arith.subf %1, %8 : vector<16x64xf32>
    %10 = arith.mulf %9, %9 : vector<16x64xf32>
    %cst_6 = arith.constant dense<0.000000e+00> : vector<64xf32>
    %11 = vector.multi_reduction <add>, %10, %cst_6 [0] : vector<16x64xf32> to vector<64xf32>
    %12 = vector.shape_cast %11 : vector<64xf32> to vector<1x64xf32>
    %cst_7 = arith.constant 6.250000e-02 : f32
    %13 = vector.broadcast %cst_7 : f32 to vector<1x64xf32>
    %14 = arith.mulf %12, %13 : vector<1x64xf32>
    %c0_8 = arith.constant 0 : index
    %c0_9 = arith.constant 0 : index
    %15 = vector.load %arg2[%c0_8, %c0_9] : memref<64x64xf32, #tpu.memory_space<vmem>>, vector<64x64xf32>
    %cst_10 = arith.constant dense<0.000000e+00> : vector<1x64xf32>
    %16 = tpu.matmul %14, %15, %cst_10 {dimension_numbers = #tpu.dot_dimension_numbers<[1], [0], [0], [1], [0, 0, 1, 1], [], []>} : vector<1x64xf32>, vector<64x64xf32>, vector<1x64xf32> -> vector<1x64xf32>
    %cst_11 = arith.constant 9.99999997E-7 : f32
    %17 = vector.broadcast %cst_11 : f32 to vector<1x64xf32>
    %18 = arith.addf %16, %17 : vector<1x64xf32>
    %19 = math.rsqrt %18 : vector<1x64xf32>
    %20 = vector.broadcast %19 : vector<1x64xf32> to vector<16x64xf32>
    %21 = arith.mulf %9, %20 : vector<16x64xf32>
    %c0_12 = arith.constant 0 : index
    %c0_13 = arith.constant 0 : index
    %22 = vector.load %arg3[%c0_12, %c0_13] : memref<1x64xf32, #tpu.memory_space<vmem>>, vector<1x64xf32>
    %23 = vector.broadcast %22 : vector<1x64xf32> to vector<16x64xf32>
    %24 = arith.mulf %21, %23 : vector<16x64xf32>
    %c0_14 = arith.constant 0 : index
    %c0_15 = arith.constant 0 : index
    %25 = vector.load %arg4[%c0_14, %c0_15] : memref<1x64xf32, #tpu.memory_space<vmem>>, vector<1x64xf32>
    %26 = vector.broadcast %25 : vector<1x64xf32> to vector<16x64xf32>
    %27 = arith.addf %24, %26 : vector<16x64xf32>
    %28 = arith.truncf %27 : vector<16x64xf32> to vector<16x64xbf16>
    %c0_16 = arith.constant 0 : index
    %c0_17 = arith.constant 0 : index
    %29 = vector.load %arg5[%c0_16, %c0_17] : memref<64x192xbf16, #tpu.memory_space<vmem>>, vector<64x192xbf16>
    %cst_18 = arith.constant dense<0.000000e+00> : vector<16x192xf32>
    %30 = tpu.matmul %28, %29, %cst_18 {dimension_numbers = #tpu.dot_dimension_numbers<[1], [0], [0], [1], [0, 0, 1, 1], [], []>} : vector<16x64xbf16>, vector<64x192xbf16>, vector<16x192xf32> -> vector<16x192xf32>
    %c0_19 = arith.constant 0 : index
    %c0_20 = arith.constant 0 : index
    %31 = vector.load %arg6[%c0_19, %c0_20] : memref<1x192xf32, #tpu.memory_space<vmem>>, vector<1x192xf32>
    %32 = vector.broadcast %31 : vector<1x192xf32> to vector<16x192xf32>
    %33 = arith.addf %30, %32 : vector<16x192xf32>
    %34 = arith.truncf %33 : vector<16x192xf32> to vector<16x192xbf16>
    %35 = vector.extract_strided_slice %34 {offsets = [0, 0], sizes = [16, 16], strides = [1, 1]} : vector<16x192xbf16> to vector<16x16xbf16>
    %36 = vector.extract_strided_slice %34 {offsets = [0, 16], sizes = [16, 16], strides = [1, 1]} : vector<16x192xbf16> to vector<16x16xbf16>
    %37 = vector.extract_strided_slice %34 {offsets = [0, 32], sizes = [16, 16], strides = [1, 1]} : vector<16x192xbf16> to vector<16x16xbf16>
    %cst_21 = arith.constant dense<0.000000e+00> : vector<16x16xf32>
    %38 = tpu.matmul %35, %36, %cst_21 {dimension_numbers = #tpu.dot_dimension_numbers<[1], [1], [0], [0], [0, 0, 1, 0], [], []>} : vector<16x16xbf16>, vector<16x16xbf16>, vector<16x16xf32> -> vector<16x16xf32>
    %cst_22 = arith.constant dense<0xFF800000> : vector<16xf32>
    %39 = vector.multi_reduction <maximumf>, %38, %cst_22 [1] : vector<16x16xf32> to vector<16xf32>
    %40 = vector.shape_cast %39 : vector<16xf32> to vector<16x1xf32>
    %41 = vector.broadcast %40 : vector<16x1xf32> to vector<16x16xf32>
    %42 = arith.subf %38, %41 : vector<16x16xf32>
    %43 = math.exp %42 : vector<16x16xf32>
    %cst_23 = arith.constant dense<0.000000e+00> : vector<16xf32>
    %44 = vector.multi_reduction <add>, %43, %cst_23 [1] : vector<16x16xf32> to vector<16xf32>
    %45 = vector.shape_cast %44 : vector<16xf32> to vector<16x1xf32>
    %46 = tpu.reciprocal %45 {approx = true} : vector<16x1xf32> -> vector<16x1xf32>
    %47 = vector.broadcast %46 : vector<16x1xf32> to vector<16x16xf32>
    %48 = arith.mulf %43, %47 : vector<16x16xf32>
    %49 = arith.truncf %48 : vector<16x16xf32> to vector<16x16xbf16>
    %cst_24 = arith.constant dense<0.000000e+00> : vector<16x16xf32>
    %50 = tpu.matmul %49, %37, %cst_24 {dimension_numbers = #tpu.dot_dimension_numbers<[1], [0], [0], [1], [0, 0, 1, 1], [], []>} : vector<16x16xbf16>, vector<16x16xbf16>, vector<16x16xf32> -> vector<16x16xf32>
    %51 = arith.truncf %50 : vector<16x16xf32> to vector<16x16xbf16>
    %c0_25 = arith.constant 0 : index
    %c0_26 = arith.constant 0 : index
    %52 = vector.load %arg10[%c0_25, %c0_26] : memref<16x64xbf16, #tpu.memory_space<vmem>>, vector<16x16xbf16>
    tpu.vector_store %arg10[%c0_25, %c0_26], %51 {strides = array<i32>} : memref<16x64xbf16, #tpu.memory_space<vmem>>, vector<16x16xbf16>,
    %53 = vector.extract_strided_slice %34 {offsets = [0, 48], sizes = [16, 16], strides = [1, 1]} : vector<16x192xbf16> to vector<16x16xbf16>
    %54 = vector.extract_strided_slice %34 {offsets = [0, 64], sizes = [16, 16], strides = [1, 1]} : vector<16x192xbf16> to vector<16x16xbf16>
    %55 = vector.extract_strided_slice %34 {offsets = [0, 80], sizes = [16, 16], strides = [1, 1]} : vector<16x192xbf16> to vector<16x16xbf16>
    %cst_27 = arith.constant dense<0.000000e+00> : vector<16x16xf32>
    %56 = tpu.matmul %53, %54, %cst_27 {dimension_numbers = #tpu.dot_dimension_numbers<[1], [1], [0], [0], [0, 0, 1, 0], [], []>} : vector<16x16xbf16>, vector<16x16xbf16>, vector<16x16xf32> -> vector<16x16xf32>
    %cst_28 = arith.constant dense<0xFF800000> : vector<16xf32>
    %57 = vector.multi_reduction <maximumf>, %56, %cst_28 [1] : vector<16x16xf32> to vector<16xf32>
    %58 = vector.shape_cast %57 : vector<16xf32> to vector<16x1xf32>
    %59 = vector.broadcast %58 : vector<16x1xf32> to vector<16x16xf32>
    %60 = arith.subf %56, %59 : vector<16x16xf32>
    %61 = math.exp %60 : vector<16x16xf32>
    %cst_29 = arith.constant dense<0.000000e+00> : vector<16xf32>
    %62 = vector.multi_reduction <add>, %61, %cst_29 [1] : vector<16x16xf32> to vector<16xf32>
    %63 = vector.shape_cast %62 : vector<16xf32> to vector<16x1xf32>
    %64 = tpu.reciprocal %63 {approx = true} : vector<16x1xf32> -> vector<16x1xf32>
    %65 = vector.broadcast %64 : vector<16x1xf32> to vector<16x16xf32>
    %66 = arith.mulf %61, %65 : vector<16x16xf32>
    %67 = arith.truncf %66 : vector<16x16xf32> to vector<16x16xbf16>
    %cst_30 = arith.constant dense<0.000000e+00> : vector<16x16xf32>
    %68 = tpu.matmul %67, %55, %cst_30 {dimension_numbers = #tpu.dot_dimension_numbers<[1], [0], [0], [1], [0, 0, 1, 1], [], []>} : vector<16x16xbf16>, vector<16x16xbf16>, vector<16x16xf32> -> vector<16x16xf32>
    %69 = arith.truncf %68 : vector<16x16xf32> to vector<16x16xbf16>
    %c0_31 = arith.constant 0 : index
    %c16 = arith.constant 16 : index
    %70 = vector.load %arg10[%c0_31, %c16] : memref<16x64xbf16, #tpu.memory_space<vmem>>, vector<16x16xbf16>
    tpu.vector_store %arg10[%c0_31, %c16], %69 {strides = array<i32>} : memref<16x64xbf16, #tpu.memory_space<vmem>>, vector<16x16xbf16>,
    %71 = vector.extract_strided_slice %34 {offsets = [0, 96], sizes = [16, 16], strides = [1, 1]} : vector<16x192xbf16> to vector<16x16xbf16>
    %72 = vector.extract_strided_slice %34 {offsets = [0, 112], sizes = [16, 16], strides = [1, 1]} : vector<16x192xbf16> to vector<16x16xbf16>
    %73 = vector.extract_strided_slice %34 {offsets = [0, 128], sizes = [16, 16], strides = [1, 1]} : vector<16x192xbf16> to vector<16x16xbf16>
    %cst_32 = arith.constant dense<0.000000e+00> : vector<16x16xf32>
    %74 = tpu.matmul %71, %72, %cst_32 {dimension_numbers = #tpu.dot_dimension_numbers<[1], [1], [0], [0], [0, 0, 1, 0], [], []>} : vector<16x16xbf16>, vector<16x16xbf16>, vector<16x16xf32> -> vector<16x16xf32>
    %cst_33 = arith.constant dense<0xFF800000> : vector<16xf32>
    %75 = vector.multi_reduction <maximumf>, %74, %cst_33 [1] : vector<16x16xf32> to vector<16xf32>
    %76 = vector.shape_cast %75 : vector<16xf32> to vector<16x1xf32>
    %77 = vector.broadcast %76 : vector<16x1xf32> to vector<16x16xf32>
    %78 = arith.subf %74, %77 : vector<16x16xf32>
    %79 = math.exp %78 : vector<16x16xf32>
    %cst_34 = arith.constant dense<0.000000e+00> : vector<16xf32>
    %80 = vector.multi_reduction <add>, %79, %cst_34 [1] : vector<16x16xf32> to vector<16xf32>
    %81 = vector.shape_cast %80 : vector<16xf32> to vector<16x1xf32>
    %82 = tpu.reciprocal %81 {approx = true} : vector<16x1xf32> -> vector<16x1xf32>
    %83 = vector.broadcast %82 : vector<16x1xf32> to vector<16x16xf32>
    %84 = arith.mulf %79, %83 : vector<16x16xf32>
    %85 = arith.truncf %84 : vector<16x16xf32> to vector<16x16xbf16>
    %cst_35 = arith.constant dense<0.000000e+00> : vector<16x16xf32>
    %86 = tpu.matmul %85, %73, %cst_35 {dimension_numbers = #tpu.dot_dimension_numbers<[1], [0], [0], [1], [0, 0, 1, 1], [], []>} : vector<16x16xbf16>, vector<16x16xbf16>, vector<16x16xf32> -> vector<16x16xf32>
    %87 = arith.truncf %86 : vector<16x16xf32> to vector<16x16xbf16>
    %c0_36 = arith.constant 0 : index
    %c32 = arith.constant 32 : index
    %88 = vector.load %arg10[%c0_36, %c32] : memref<16x64xbf16, #tpu.memory_space<vmem>>, vector<16x16xbf16>
    tpu.vector_store %arg10[%c0_36, %c32], %87 {strides = array<i32>} : memref<16x64xbf16, #tpu.memory_space<vmem>>, vector<16x16xbf16>,
    %89 = vector.extract_strided_slice %34 {offsets = [0, 144], sizes = [16, 16], strides = [1, 1]} : vector<16x192xbf16> to vector<16x16xbf16>
    %90 = vector.extract_strided_slice %34 {offsets = [0, 160], sizes = [16, 16], strides = [1, 1]} : vector<16x192xbf16> to vector<16x16xbf16>
    %91 = vector.extract_strided_slice %34 {offsets = [0, 176], sizes = [16, 16], strides = [1, 1]} : vector<16x192xbf16> to vector<16x16xbf16>
    %cst_37 = arith.constant dense<0.000000e+00> : vector<16x16xf32>
    %92 = tpu.matmul %89, %90, %cst_37 {dimension_numbers = #tpu.dot_dimension_numbers<[1], [1], [0], [0], [0, 0, 1, 0], [], []>} : vector<16x16xbf16>, vector<16x16xbf16>, vector<16x16xf32> -> vector<16x16xf32>
    %cst_38 = arith.constant dense<0xFF800000> : vector<16xf32>
    %93 = vector.multi_reduction <maximumf>, %92, %cst_38 [1] : vector<16x16xf32> to vector<16xf32>
    %94 = vector.shape_cast %93 : vector<16xf32> to vector<16x1xf32>
    %95 = vector.broadcast %94 : vector<16x1xf32> to vector<16x16xf32>
    %96 = arith.subf %92, %95 : vector<16x16xf32>
    %97 = math.exp %96 : vector<16x16xf32>
    %cst_39 = arith.constant dense<0.000000e+00> : vector<16xf32>
    %98 = vector.multi_reduction <add>, %97, %cst_39 [1] : vector<16x16xf32> to vector<16xf32>
    %99 = vector.shape_cast %98 : vector<16xf32> to vector<16x1xf32>
    %100 = tpu.reciprocal %99 {approx = true} : vector<16x1xf32> -> vector<16x1xf32>
    %101 = vector.broadcast %100 : vector<16x1xf32> to vector<16x16xf32>
    %102 = arith.mulf %97, %101 : vector<16x16xf32>
    %103 = arith.truncf %102 : vector<16x16xf32> to vector<16x16xbf16>
    %cst_40 = arith.constant dense<0.000000e+00> : vector<16x16xf32>
    %104 = tpu.matmul %103, %91, %cst_40 {dimension_numbers = #tpu.dot_dimension_numbers<[1], [0], [0], [1], [0, 0, 1, 1], [], []>} : vector<16x16xbf16>, vector<16x16xbf16>, vector<16x16xf32> -> vector<16x16xf32>
    %105 = arith.truncf %104 : vector<16x16xf32> to vector<16x16xbf16>
    %c0_41 = arith.constant 0 : index
    %c48 = arith.constant 48 : index
    %106 = vector.load %arg10[%c0_41, %c48] : memref<16x64xbf16, #tpu.memory_space<vmem>>, vector<16x16xbf16>
    tpu.vector_store %arg10[%c0_41, %c48], %105 {strides = array<i32>} : memref<16x64xbf16, #tpu.memory_space<vmem>>, vector<16x16xbf16>,
    %c0_42 = arith.constant 0 : index
    %c0_43 = arith.constant 0 : index
    %107 = vector.load %arg10[%c0_42, %c0_43] : memref<16x64xbf16, #tpu.memory_space<vmem>>, vector<16x64xbf16>
    %c0_44 = arith.constant 0 : index
    %c0_45 = arith.constant 0 : index
    %108 = vector.load %arg7[%c0_44, %c0_45] : memref<64x64xbf16, #tpu.memory_space<vmem>>, vector<64x64xbf16>
    %cst_46 = arith.constant dense<0.000000e+00> : vector<16x64xf32>
    %109 = tpu.matmul %107, %108, %cst_46 {dimension_numbers = #tpu.dot_dimension_numbers<[1], [0], [0], [1], [0, 0, 1, 1], [], []>} : vector<16x64xbf16>, vector<64x64xbf16>, vector<16x64xf32> -> vector<16x64xf32>
    %c0_47 = arith.constant 0 : index
    %c0_48 = arith.constant 0 : index
    %110 = vector.load %arg8[%c0_47, %c0_48] : memref<1x64xf32, #tpu.memory_space<vmem>>, vector<1x64xf32>
    %111 = vector.broadcast %110 : vector<1x64xf32> to vector<16x64xf32>
    %112 = arith.addf %109, %111 : vector<16x64xf32>
    %113 = arith.addf %1, %112 : vector<16x64xf32>
    %c0_49 = arith.constant 0 : index
    %c0_50 = arith.constant 0 : index
    %c0_51 = arith.constant 0 : index
    %114 = vector.load %arg9[%c0_49, %c0_50, %c0_51] : memref<1x16x64xf32, #tpu.memory_space<vmem>>, vector<1x16x64xf32>
    %115 = vector.shape_cast %114 : vector<1x16x64xf32> to vector<16x64xf32>
    %116 = vector.shape_cast %113 : vector<16x64xf32> to vector<1x16x64xf32>
    tpu.vector_store %arg9[%c0_49, %c0_50, %c0_51], %116 {strides = array<i32>} : memref<1x16x64xf32, #tpu.memory_space<vmem>>, vector<1x16x64xf32>,
    return
  }
  func.func @transform_0(%arg0: i32) -> (i32, i32, i32) {
    %c0_i32 = arith.constant 0 : i32
    %c0_i32_0 = arith.constant 0 : i32
    %c0_i32_1 = arith.constant 0 : i32
    return %arg0, %c0_i32, %c0_i32_0 : i32, i32, i32
  }
  func.func @transform_1(%arg0: i32) -> (i32, i32) {
    %c0_i32 = arith.constant 0 : i32
    %c0_i32_0 = arith.constant 0 : i32
    %c0_i32_1 = arith.constant 0 : i32
    return %c0_i32, %c0_i32_0 : i32, i32
  }
  func.func @transform_2(%arg0: i32) -> (i32, i32) {
    %c0_i32 = arith.constant 0 : i32
    %c0_i32_0 = arith.constant 0 : i32
    %c0_i32_1 = arith.constant 0 : i32
    return %c0_i32, %c0_i32_0 : i32, i32
  }
  func.func @transform_3(%arg0: i32) -> (i32, i32) {
    %c0_i32 = arith.constant 0 : i32
    %c0_i32_0 = arith.constant 0 : i32
    %c0_i32_1 = arith.constant 0 : i32
    return %c0_i32, %c0_i32_0 : i32, i32
  }
  func.func @transform_4(%arg0: i32) -> (i32, i32) {
    %c0_i32 = arith.constant 0 : i32
    %c0_i32_0 = arith.constant 0 : i32
    %c0_i32_1 = arith.constant 0 : i32
    return %c0_i32, %c0_i32_0 : i32, i32
  }
  func.func @transform_5(%arg0: i32) -> (i32, i32) {
    %c0_i32 = arith.constant 0 : i32
    %c0_i32_0 = arith.constant 0 : i32
    %c0_i32_1 = arith.constant 0 : i32
    return %c0_i32, %c0_i32_0 : i32, i32
  }
  func.func @transform_6(%arg0: i32) -> (i32, i32) {
    %c0_i32 = arith.constant 0 : i32
    %c0_i32_0 = arith.constant 0 : i32
    %c0_i32_1 = arith.constant 0 : i32
    return %c0_i32, %c0_i32_0 : i32, i32
  }
  func.func @transform_7(%arg0: i32) -> (i32, i32) {
    %c0_i32 = arith.constant 0 : i32
    %c0_i32_0 = arith.constant 0 : i32
    %c0_i32_1 = arith.constant 0 : i32
    return %c0_i32, %c0_i32_0 : i32, i32
  }
  func.func @transform_8(%arg0: i32) -> (i32, i32, i32) {
    %c0_i32 = arith.constant 0 : i32
    %c0_i32_0 = arith.constant 0 : i32
    %c0_i32_1 = arith.constant 0 : i32
    return %arg0, %c0_i32, %c0_i32_0 : i32, i32, i32
  }
}

</mosaic_0001>

<bundles_post_ra>
// kernel: tpu_custom_call.1
= control target key start
LH: loop header
LB: loop body
LE: loop exit
PB: predicated region body
PF: predicated region fallthrough
CT: control target
= control target key end

     0   :  { %s2387_s0 = inlined_call_operand.hbm [shape: f32[2,16,64], index: 0, kind: input, shape index: {}]   ;;  %s2388_s1 = inlined_call_operand.hbm [shape: f32[64,64], index: 1, kind: input, shape index: {}]   ;;  %s2389_s2 = inlined_call_operand.vmem [shape: f32[1,64], index: 2, kind: input, shape index: {}]   ;;  %s2390_s3 = inlined_call_operand.vmem [shape: f32[1,64], index: 3, kind: input, shape index: {}]   ;;  %s2391_s4 = inlined_call_operand.hbm [shape: bf16[64,192], index: 4, kind: input, shape index: {}]   ;;  %s2392_s5 = inlined_call_operand.vmem [shape: f32[1,192], index: 5, kind: input, shape index: {}]   ;;  %s2393_s6 = inlined_call_operand.hbm [shape: bf16[64,64], index: 6, kind: input, shape index: {}]   ;;  %s2394_s7 = inlined_call_operand.vmem [shape: f32[1,64], index: 7, kind: input, shape index: {}]   ;;  %s2395_s8 = inlined_call_operand.hbm [shape: f32[2,16,64], index: 8, kind: output, shape index: {}]  }
   0x1   :  { %2402 = sst [smem:[#allocation16_spill]] %s2388_s1 }
   0x2   :  { %2403 = sst [smem:[#allocation17_spill]] %s2391_s4 }
   0x3   :  { %13 = vsyncpa [#allocation4], 0 }
   0x4   :  { %15 = vsyncpa [#allocation4 + $0x1], 0 }
   0x5   :  { %16 = vsyncpa [#allocation7], 0 }
   0x6   :  { %17 = vsyncpa [#allocation10], 0 }
   0x7   :  { %18 = vsyncpa [#allocation5], 0 }
   0x8   :  { %20 = vsyncpa [#allocation5 + $0x1], 0  ;;  %s2029_s27 = smov 0   ;;  %s2031_s28 = smov 0  }
   0x9   :  { %s2033_s29 = smov 0   ;;  %s2035_s30 = smov 0  }
   0xa LB: > { %s2050_s9 = sadd.s32 4294967295, %s1961_s30   ;;  %s1436_s10 = sadd.s32 4294967294, %s1961_s30   ;;  %s1961_s30 = sphi %s2035_s30, %s2426_s30   ;;  %s1957_s29 = sphi %s2033_s29, %s2425_s29   ;;  %s1953_s28 = sphi %s2031_s28, %s2424_s28   ;;  %s1949_s27 = sphi %s2029_s27, %s2423_s27  }
   0xb   : > { %p46_p0 = scmp.ne.s32.totalorder %s1953_s28, %s1949_s27  ;;  %p2396_p1 = scmp.eq.s32.totalorder %s2050_s9, 0 }
   0xc   : > { %p217_p2 = scmp.eq.s32.totalorder %s2050_s9, 1  ;;  %p223_p3 = scmp.eq.s32.totalorder %s1436_s10, 1 }
   0xd   : > { %p2059_p4 = por %p2396_p1, %p46_p0  ;;  %p1437_p5 = scmp.ge.s32.totalorder %s1961_s30, 1 }
   0xe   : > { %p2064_p6 = por %p223_p3, %p46_p0  ;;  %p230_p7 = scmp.lt.s32.totalorder %s1961_s30, 3 }
   0xf   : > { %s2404_s11 = scalar_select %p2059_p4, 1, 0 }
  0x10   : > { %s2405_s12 = scalar_select %p2064_p6, 1, 0 }
  0x11   : > { %p2069_p8 = pnand %p1437_p5, %p230_p7  ;;  %s1963_s14 = smov [#allocation6]  }
  0x12   : > { %s242_s15 = sshll.u32 %s1963_s14, 4  ;;  %s1964_s17 = smov [#allocation8]   ;;  %s243_s15 = int_to_ptr.vmem [resolvable:$true] %s242_s15 }
  0x13   : > { %s2406_s13 = scalar_select %p2069_p8, 1, 0 }
  0x14   : > { %p1655_p9 = pneg %p2069_p8  ;;  %s261_s18 = sshll.u32 %s1964_s17, 4  ;;  %s262_s18 = int_to_ptr.vmem [resolvable:$true] %s261_s18 }
  0x15   : > { %s1965_s19 = smov [#allocation9]   ;;  %s1794_s21 = scalar_lea.vmem %s243_s15, 1024 }
  0x16   : > { %p2078_p11 = pnand %p1655_p9, %p2396_p1  ;;  %s277_s20 = sshll.u32 %s1965_s19, 4  ;;  %s278_s20 = int_to_ptr.vmem [resolvable:$true] %s277_s20 }
  0x17   : > { %p1795_p13 = scmp.ne.s32.totalorder %s243_s15, %s1794_s21  ;;  %p1802_p5 = scmp.lt.s32.totalorder %s243_s15, %s243_s15 }
  0x18   : > { %p1785_p12 = pneg %p2078_p11  ;;  %p1803_p7 = scmp.lt.s32.totalorder %s1794_s21, %s1794_s21 }
  0x1a   : > { %p1797_p0 = pnand %p1795_p13, %p1785_p12  ;;  %p1804_p9 = por %p1803_p7, %p1802_p5 }
  0x1c   : > { %p1798_p3 = pneg %p1797_p0 }
  0x1e   : > { %p1805_p10 = pnand %p1804_p9, %p1798_p3 }
  0x20   : > { %1808 = shalt.err (!%p1805_p10)
}
  0x21   : > { %s2397_s22 = smov 128   ;;  %s2398_s23 = smov 8  }
  0x22   : > { %s2408_s1 = sld [smem:[#allocation16_spill]]  ;;  %s1820_s26 = scalar_lea.vmem %s262_s18, 1024 }
  0x23   : > { %p1821_p13 = scmp.ne.s32.totalorder %s262_s18, %s1820_s26  ;;  %p1828_p3 = scmp.lt.s32.totalorder %s262_s18, %s262_s18 }
  0x24   : > { %p1829_p10 = scmp.lt.s32.totalorder %s1820_s26, %s1820_s26 }
  0x25   : > { %p1823_p0 = pnand %p1821_p13, %p1785_p12 }
  0x26   : > { %p1830_p7 = por %p1829_p10, %p1828_p3 }
  0x27   : > { %p1824_p5 = pneg %p1823_p0 }
  0x28   : > { %1658 = dma.hbm_to_vmem [thread:$0]  (!%p2078_p11), %s2408_s1, 1024, %s243_s15, [#allocation7], %s2397_s22, %s2397_s22, %s2398_s23  }
  0x29   : > { %p1831_p9 = pnand %p1830_p7, %p1824_p5 }
  0x2b   : > { %1834 = shalt.err (!%p1831_p9)
}
  0x2c   : > { %s2409_s4 = sld [smem:[#allocation17_spill]]  ;;  %s1846_s15 = scalar_lea.vmem %s278_s20, 512 }
  0x2d   : > { %p1847_p1 = scmp.ne.s32.totalorder %s278_s20, %s1846_s15  ;;  %p1854_p3 = scmp.lt.s32.totalorder %s278_s20, %s278_s20 }
  0x2e   : > { %p1855_p5 = scmp.lt.s32.totalorder %s1846_s15, %s1846_s15 }
  0x2f   : > { %p1849_p13 = pnand %p1847_p1, %p1785_p12 }
  0x30   : > { %p1856_p10 = por %p1855_p5, %p1854_p3 }
  0x31   : > { %p1850_p0 = pneg %p1849_p13 }
  0x32   : > { %1661 = dma.hbm_to_vmem [thread:$0]  (!%p2078_p11), %s2409_s4, 1024, %s262_s18, [#allocation7], %s2397_s22, %s2397_s22, %s2398_s23  }
  0x33   : > { %p1857_p7 = pnand %p1856_p10, %p1850_p0 }
  0x35   : > { %1860 = shalt.err (!%p1857_p7)
}
  0x36   : > { %s1968_s17 = smov 64   ;;  %s1969_s18 = smov 4  }
  0x37   : > { %1664 = dma.hbm_to_vmem [thread:$0]  (!%p2078_p11), %s2393_s6, 512, %s278_s20, [#allocation10], %s1968_s17, %s1968_s17, %s1969_s18  }
  0x38   : > { %s2115_s24 = sadd.s32 1, %s1961_s30   ;;  %s33_s26 = sadd.s32 1, %s1957_s29 }
  0x39   : > { %s30_s25 = ssub.s32 %s1961_s30, %s2115_s24  ;;  %p40_p12 = scmp.ne.s32.totalorder %s1957_s29, %s1953_s28 }
  0x3a   : > { %p31_p1 = scmp.eq.s32.totalorder %s30_s25, 0  ;;  %p41_p9 = scmp.eq.s32.totalorder %s1961_s30, 0 }
  0x3b   : > { %p1676_p13 = scmp.lt.s32.totalorder %s1961_s30, 2  ;;  %p2129_p3 = por %p217_p2, %p40_p12 }
  0x3c   : > { %s2125_s10 = scalar_select %p31_p1, %s1957_s29, %s33_s26  }
  0x3d   : > { %p42_p0 = por %p41_p9, %p40_p12  ;;  %s294_s16 = sand.u32 1, %s1957_s29  }
  0x3e   : > { %s2410_s14 = scalar_select %p2129_p3, 1, 0 }
  0x3f   : > { %s1492_s15 = sshll.u32 %s1961_s30, 8  ;;  %s1442_s20 = sshll.u32 %s294_s16, 4 }
  0x40   : > { %s2138_s19 = scalar_lea.hbm %s2387_s0, %s1492_s15  ;;  %s298_s21 = scalar_lea.vmem [#allocation3], %s1442_s20 }
  0x41   : > { %s305_s25 = sshll.u32 %s298_s21, 4  ;;  %p2140_p11 = pnand %p1676_p13, %p42_p0  ;;  %s2144_s25 = int_to_ptr.vmem [resolvable:$true] %s305_s25 }
  0x42   : > { %s2146_s22 = scalar_lea.sflag [#allocation4], %s294_s16  ;;  %s1861_s23 = scalar_lea.hbm %s2138_s19, 256 }
  0x43   : > { %p1862_p2 = scmp.ne.s32.totalorder %s2138_s19, %s1861_s23  ;;  %p1863_p5 = pneg %p2140_p11 }
  0x44   : > { %s1866_s20 = scalar_lea.hbm %s2387_s0, 512  ;;  %p1867_p1 = scmp.lt.s32.totalorder %s2138_s19, %s2387_s0 }
  0x45   : > { %p1864_p10 = pnand %p1863_p5, %p1862_p2  ;;  %p1868_p12 = scmp.lt.s32.totalorder %s1866_s20, %s1861_s23 }
  0x47   : > { %p1865_p7 = pneg %p1864_p10  ;;  %p1869_p9 = por %p1868_p12, %p1867_p1 }
  0x49   : > { %p1870_p13 = pnand %p1869_p9, %p1865_p7 }
  0x4b   : > { %1873 = shalt.err (!%p1870_p13)
}
  0x4c   : > { %s1874_s16 = scalar_lea.vmem %s2144_s25, 256  ;;  %s1970_s1 = smov [#allocation3]  }
  0x4d   : > { %p1875_p0 = scmp.ne.s32.totalorder %s2144_s25, %s1874_s16  ;;  %s1879_s4 = sshll.u32 %s1970_s1, 4  ;;  %s1880_s4 = int_to_ptr.vmem [resolvable:$false] %s1879_s4 }
  0x4e   : > { %s1881_s15 = scalar_lea.vmem %s1880_s4, 512  ;;  %p1882_p10 = scmp.lt.s32.totalorder %s2144_s25, %s1880_s4 }
  0x4f   : > { %p1877_p6 = pnand %p1875_p0, %p1863_p5  ;;  %p1883_p3 = scmp.lt.s32.totalorder %s1881_s15, %s1874_s16 }
  0x51   : > { %p1878_p2 = pneg %p1877_p6  ;;  %p1884_p4 = por %p1883_p3, %p1882_p10 }
  0x53   : > { %p1885_p8 = pnand %p1884_p4, %p1878_p2 }
  0x55   : > { %1888 = shalt.err (!%p1885_p8)
}
  0x56   : > { %s2412_s23 = smov 8   ;;  %s2413_s17 = smov 128  }
  0x57   : > { %1668 = dma.hbm_to_vmem [thread:$0]  (!%p2140_p11), %s2138_s19, 256, %s2144_s25, %s2146_s22, %s2413_s17, %s2413_s17, %s2412_s23  }
  0x58   : > { %p2414_p6 = scmp.ne.s32.totalorder %s2406_s13, 0 }
  0x59   : > { %s2173_s1 = sand.u32 (!%p2414_p6), 1, %s1953_s28   ;;  %p2415_p4 = scmp.ne.s32.totalorder (!%p2414_p6), %s2404_s11, 0 }
  0x5a   : > { %317 = sbr.rel (%p2414_p6) target bundleno = 2466 (0x9a2), region = 52  ;;  %s1446_s4 = sshll.u32 (!%p2414_p6), %s2173_s1, 4 }
  0x5b   : > { %s320_s20 = scalar_lea.sflag (!%p2414_p6), [#allocation4], %s2173_s1  ;;  %s323_s26 = scalar_lea.vmem (!%p2414_p6), [#allocation3], %s1446_s4 }
  0x5f   : > { %1932 = dma.done.wait (%p2415_p4), %s320_s20, 256  }
  0x60   : > { %1934 = vsyncadd (%p2415_p4), %s320_s20, 4294967040  ;;  %p2416_p8 = scmp.eq.s32.totalorder %s2050_s9, 0 }
  0x62   : > { %1936 = dma.done.wait (%p2416_p8), [#allocation7], 2048   ;;  %p2417_p3 = pmov %p2416_p8 }
  0x64   : > { %1938 = vsyncadd (%p2417_p3), [#allocation7], 4294965248  ;;  %p2418_p11 = pmov %p2417_p3 }
  0x65   : > { %p2419_p5 = pmov %p2417_p3 }
  0x66   : > { %1940 = dma.done.wait (%p2418_p11), [#allocation10], 512  }
  0x67   : > { %1942 = vsyncadd (%p2419_p5), [#allocation10], 4294966784  ;;  %v1971_v0 = vmov 0.0   ;;  %vm1972_vm0 = vmmov 0   ;;  %v389_v1 = vld [vmem:[#allocation6 + $0x38] sm:$0xff]  ;;  %v388_v2 = vld [vmem:[#allocation6 + $0x30] sm:$0xff]  ;;  %v463_v21 = vlaneseq }
  0x68   : > { %1541 = vmatprep.subr.mxu0 %v1971_v0  ;;  %1557 = vmatprep.mubr.msk.f32.mxu0 %vm1972_vm0, %v1971_v0  ;;  %vm371_vm1 = vcmask 523264   ;;  %v387_v3 = vld [vmem:[#allocation6 + $0x28] sm:$0xff]  ;;  %v386_v4 = vld [vmem:[#allocation6 + $0x20] sm:$0xff]  ;;  %v385_v8 = vld [vmem:[#allocation6 + $0x18] sm:$0xff]  ;;  %v1973_v49 = vmov 0   ;;  %s1974_s21 = smov 112  }
  0x69   : > { %1560 = vmatprep.subr.mxu1 %v1971_v0  ;;  %1576 = vmatprep.mubr.msk.f32.mxu1 %vm1972_vm0, %v1971_v0  ;;  %v2198_v5 = vld [vmem:[%s323_s26] sm:$0xff]  ;;  %v2201_v6 = vld [vmem:[%s323_s26 + $0x8] sm:$0xff]  ;;  %v2221_v22 = vshrl.u32 %v463_v21, 7  ;;  %vm691_vm2 = vcmask 130048   ;;  %s1975_s16 = smov 96   ;;  %s1976_s15 = smov 16  }
  0x6a   : > { %1542 = vmatpush3.msra.mxu0 %v389_v1  ;;  %1561 = vmatpush3.msra.mxu1 %v389_v1  ;;  %v372_v7 = vsel %vm371_vm1, %v2198_v5, 0.0  ;;  %v373_v9 = vsel %vm371_vm1, %v2201_v6, 0.0  ;;  %v384_v11 = vld [vmem:[#allocation6 + $0x10] sm:$0xff]  ;;  %v383_v14 = vld [vmem:[#allocation6 + $0x8] sm:$0xff]  ;;  %v382_v16 = vld [vmem:[#allocation6] sm:$0xff]  ;;  %s1977_s23 = smov 64  }
  0x6b   : > { %1543 = vmatprep.subr.mxu0 %v1971_v0  ;;  %1562 = vmatprep.subr.mxu1 %v1971_v0  ;;  %v374_v10 = vadd.f32 %v373_v9, %v372_v7  ;;  %v465_v23 = vsub.s32 0, %v2221_v22  ;;  %v1734_v41 = vld [vmem:[#allocation8 + $0x34] ss:$8 sps:$4 sm:$0xff]   ;;  %v1732_v42 = vld [vmem:[#allocation8 + $0x30] ss:$8 sps:$4 sm:$0xff]   ;;  %s1978_s17 = smov 80  }
  0x6c   : > { %1544 = vmatpush3.msra.mxu0 %v388_v2  ;;  %1563 = vmatpush3.msra.mxu1 %v388_v2  ;;  %v1737_v43 = vld [vmem:[#allocation8 + $0x24] ss:$8 sps:$4 sm:$0xff]   ;;  %v1735_v44 = vld [vmem:[#allocation8 + $0x20] ss:$8 sps:$4 sm:$0xff]   ;;  %v1740_v45 = vld [vmem:[#allocation8 + $0x14] ss:$8 sps:$4 sm:$0xff]  }
  0x6d   : > { %1545 = vmatprep.subr.mxu0 %v1971_v0  ;;  %1564 = vmatprep.subr.mxu1 %v1971_v0  ;;  %v375_v12 = vrot.slane %v374_v10, 4  ;;  %v1738_v46 = vld [vmem:[#allocation8 + $0x10] ss:$8 sps:$4 sm:$0xff]   ;;  %v1743_v47 = vld [vmem:[#allocation8 + $0x4] ss:$8 sps:$4 sm:$0xff]   ;;  %s1979_s20 = smov 32  }
  0x6e   : > { %1546 = vmatpush3.msra.mxu0 %v387_v3  ;;  %1565 = vmatpush3.msra.mxu1 %v387_v3  ;;  %v1741_v48 = vld [vmem:[#allocation8] ss:$8 sps:$4 sm:$0xff]   ;;  %v1453_v55 = vld [vmem:[%s2389_s2] ss:$0 sm:$0xff]  ;;  %vm817_vm3 = vcmask 125952   ;;  %s1980_s26 = smov 48  }
  0x6f   : > { %1547 = vmatprep.subr.mxu0 %v1971_v0  ;;  %1566 = vmatprep.subr.mxu1 %v1971_v0  ;;  %v376_v13 = vadd.f32 %v375_v12, %v374_v10  ;;  %v1454_v58 = vld [vmem:[%s2390_s3] ss:$0 sm:$0xff]  ;;  %vm953_vm4 = vcmask 257152   ;;  %vm1086_vm5 = vcmask 388352   ;;  %vm1223_vm6 = vcmask 519552   ;;  %s1501_s22 = sshll.u32 %s2050_s9, 8 }
  0x70   : > { %1548 = vmatpush3.msra.mxu0 %v386_v4  ;;  %1567 = vmatpush3.msra.mxu1 %v386_v4  ;;  %v588_v1 = vld [vmem:[%s2392_s5] sm:$0x3]  ;;  %s367_s19 = scalar_lea.vmem [#allocation11], %s1446_s4  ;;  %s1321_s9 = scalar_lea.sflag [#allocation5], %s2173_s1 }
  0x71   : > { %1549 = vmatprep.subr.mxu0 %v1971_v0  ;;  %1568 = vmatprep.subr.mxu1 %v1971_v0  ;;  %v377_v15 = vrot.slane %v376_v13, 2  ;;  %v593_v3 = vrot.slane %v588_v1, %v465_v23  ;;  %s1334_s25 = sshll.u32 %s367_s19, 4  ;;  %p2420_p1 = scmp.ne.s32.totalorder %s2410_s14, 0  ;;  %s2342_s25 = int_to_ptr.vmem [resolvable:$true] %s1334_s25 }
  0x72   : > { %1550 = vmatpush3.msra.mxu0 %v385_v8  ;;  %1569 = vmatpush3.msra.mxu1 %v385_v8  ;;  %s1889_s4 = scalar_lea.vmem %s2342_s25, 256 }
  0x73   : > { %1551 = vmatprep.subr.mxu0 %v1971_v0  ;;  %1570 = vmatprep.subr.mxu1 %v1971_v0  ;;  %v378_v17 = vadd.f32 %v377_v15, %v376_v13  ;;  %p1890_p7 = scmp.ne.s32.totalorder %s2342_s25, %s1889_s4 }
  0x74   : > { %1552 = vmatpush3.msra.mxu0 %v384_v11  ;;  %1571 = vmatpush3.msra.mxu1 %v384_v11 }
  0x75   : > { %1553 = vmatprep.subr.mxu0 %v1971_v0  ;;  %1572 = vmatprep.subr.mxu1 %v1971_v0  ;;  %v379_v18 = vrot.slane %v378_v17, 1  ;;  %p1891_p12 = pnand %p1890_p7, %p2420_p1 }
  0x76   : > { %1554 = vmatpush3.msra.mxu0 %v383_v14  ;;  %1573 = vmatpush3.msra.mxu1 %v383_v14 }
  0x77   : > { %1555 = vmatprep.subr.mxu0 %v1971_v0  ;;  %1574 = vmatprep.subr.mxu1 %v1971_v0  ;;  %v380_v19 = vadd.f32 %v379_v18, %v378_v17  ;;  %p1892_p9 = pneg %p1891_p12 }
  0x78   : > { %1556 = vmatpush3.msra.mxu0 %v382_v16  ;;  %1575 = vmatpush3.msra.mxu1 %v382_v16 }
  0x79   : > { %1579 = vmatprep.subr.bf16.mxu1 %v1971_v0  ;;  %v381_v20 = vmul.f32 0.0625, %v380_v19  ;;  %651 = vmatprep.subr.bf16.mxu0 %v1734_v41 }
  0x7b   : > { %1558 = vmatmul.mubr.msk.f32.vlgmr.msra.gmra.mxu0 %vm371_vm1, %v381_v20 }
  0x7c   : > { %652 = vmatpush1.bf16.msra.mxu0 %v1732_v42  ;;  %675 = vmatprep.mubr.bf16.mxu0 %v1973_v49 }
  0x7d   : > { %653 = vmatprep.subr.bf16.mxu0 %v1737_v43 }
  0x80   : > { %654 = vmatpush1.bf16.msra.mxu0 %v1735_v44 }
  0x81   : > { %655 = vmatprep.subr.bf16.mxu0 %v1740_v45 }
  0x84   : > { %656 = vmatpush1.bf16.msra.mxu0 %v1738_v46 }
  0x85   : > { %657 = vmatprep.subr.bf16.mxu0 %v1743_v47 }
  0x88   : > { %658 = vmatpush1.bf16.msra.mxu0 %v1741_v48 }
  0x89   : > { %1603 = vmatprep.subr.bf16.mxu0 %v1971_v0 }
 0x13b   : > { %v459_v24 = vpop.f32.mrf.mxu0 }
 0x13c   : > { %v466_v25 = vrot.slane %v459_v24, %v465_v23 }
 0x13d   : > { %v1559_v26 = vpop.f32.mrf.mxu0 }
 0x13e   : > { %v467_v27 = vsub.f32 %v2198_v5, %v466_v25  ;;  %v468_v28 = vsub.f32 %v2201_v6, %v466_v25 }
 0x140   : > { %v469_v29 = vmul.f32 %v467_v27, %v467_v27  ;;  %v470_v30 = vmul.f32 %v468_v28, %v468_v28 }
 0x142   : > { %v471_v31 = vsel %vm371_vm1, %v469_v29, 0.0  ;;  %v472_v32 = vsel %vm371_vm1, %v470_v30, 0.0 }
 0x143   : > { %v473_v33 = vadd.f32 %v472_v32, %v471_v31 }
 0x145   : > { %v474_v34 = vrot.slane %v473_v33, 4 }
 0x147   : > { %v475_v35 = vadd.f32 %v474_v34, %v473_v33  ;;  %v596_v33 = vsub.s32 1, %v2221_v22 }
 0x149   : > { %v476_v36 = vrot.slane %v475_v35, 2 }
 0x14b   : > { %v477_v37 = vadd.f32 %v476_v36, %v475_v35  ;;  %v597_v35 = vrot.slane %v588_v1, %v596_v33 }
 0x14d   : > { %v478_v38 = vrot.slane %v477_v37, 1 }
 0x14f   : > { %v479_v39 = vadd.f32 %v478_v38, %v477_v37 }
 0x151   : > { %v480_v40 = vmul.f32 0.0625, %v479_v39 }
 0x153   : > { %1577 = vmatmul.mubr.msk.f32.vlgmr.msra.gmra.mxu1 %vm371_vm1, %v480_v40 }
 0x154   : > { %1581 = vmatprep.mubr.msk.bf16.mxu1 %vm1972_vm0, %v1971_v0 }
 0x213   : > { %v550_v50 = vpop.f32.mrf.mxu1 }
 0x214   : > { %v551_v51 = vadd.f32 1e-06, %v550_v50 }
 0x215   : > { %v1578_v52 = vpop.f32.mrf.mxu1 }
 0x216   : > { %1749 = vrsqrt.f32 %v551_v51 }
 0x223   : > { %v1750_v53 = vpop.eup %1749 }
 0x224   : > { %v558_v54 = vrot.slane %v1750_v53, %v465_v23 }
 0x226   : > { %v559_v56 = vmul.f32 %v558_v54, %v467_v27  ;;  %v560_v57 = vmul.f32 %v558_v54, %v468_v28 }
 0x228   : > { %v568_v59 = vmul.f32 %v1453_v55, %v559_v56  ;;  %v569_v60 = vmul.f32 %v1453_v55, %v560_v57 }
 0x22a   : > { %v577_v61 = vadd.f32 %v1454_v58, %v568_v59  ;;  %v578_v62 = vadd.f32 %v1454_v58, %v569_v60 }
 0x22c   : > { %v579_v63 = vpack.c.bf16 %v578_v62, %v577_v61 }
 0x22e   : > { %1463 = vmatmul.mubr.msk.bf16.vlgmr.msra.gmra.mxu0 %vm371_vm1, %v579_v63 }
 0x22f   : > { %1605 = vmatprep.mubr.msk.bf16.mxu0 %vm1972_vm0, %v1971_v0 }
 0x2ee   : > { %v677_v2 = vpop.f32.mrf.mxu0 }
 0x2ef   : > { %v678_v8 = vadd.f32 %v677_v2, %v593_v3 }
 0x2f0   : > { %v679_v4 = vpop.f32.mrf.mxu0 }
 0x2f1   : > { %v680_v37 = vadd.f32 %v679_v4, %v597_v35 }
 0x2f2   : > { %v681_v7 = vpop.f32.mrf.mxu0 }
 0x2f3   : > { %v682_v9 = vadd.f32 %v681_v7, %v593_v3 }
 0x2f4   : > { %v683_v34 = vpop.f32.mrf.mxu0 }
 0x2f5   : > { %v2244_v10 = vpack.c.bf16 %v682_v9, %v678_v8  ;;  %v684_v36 = vadd.f32 %v683_v34, %v597_v35 }
 0x2f7   : > { %689 = vrot.lane.b32.xlu0 %v2244_v10, %s1974_s21  ;;  %v2271_v38 = vpack.c.bf16 %v684_v36, %v680_v37 }
 0x369   : > { %v690_v11 = vpop.permute.xlu0 %689 }
 0x36a   : > { %v696_v12 = vsel %vm691_vm2, %v690_v11, 0 }
 0x36b   : > { %1580 = vmatpush3.bf16.xpose.msra.mxu1 %v696_v12 }
 0x36c   : > { %1585 = vmatprep.subr.bf16.mxu1 %v1971_v0 }
 0x372   : > { %1582 = vmatmul.mubr.msk.bf16.vlgmr.msra.gmra.mxu1 %vm691_vm2, %v2244_v10 }
 0x373   : > { %1587 = vmatprep.mubr.msk.bf16.mxu1 %vm1972_vm0, %v1971_v0 }
 0x432   : > { %v732_v13 = vpop.f32.mrf.mxu1 }
 0x433   : > { %v739_v14 = vsel %vm691_vm2, %v732_v13, -inf }
 0x434   : > { %740 = vmax.xlane.f32.xlu0 %v739_v14  ;;  %v1583_v15 = vpop.f32.mrf.mxu1 }
 0x436   : > { %v735_v16 = vpop.f32.mrf.mxu1 }
 0x437   : > { %v742_v17 = vsel %vm691_vm2, %v735_v16, -inf }
 0x438   : > { %743 = vmax.xlane.f32.xlu1 %v742_v17  ;;  %v1584_v18 = vpop.f32.mrf.mxu1 }
 0x449   : > { %762 = vrot.lane.b32.xlu1 %v2244_v10, %s1975_s16 }
 0x44a   : > { %958 = vrot.lane.b32.xlu0 %v2244_v10, %s1976_s15 }
 0x4bd   : > { %v741_v19 = vpop.xlane.xlu0 %740 }
 0x4be   : > { %v745_v20 = vsub.f32 %v732_v13, %v741_v19 }
 0x4c0   : > { %v747_v21 = vmul.f32 1.442695, %v745_v20 }
 0x4c1   : > { %v959_v23 = vpop.permute.xlu0 %958  ;;  %v744_v24 = vpop.xlane.xlu1 %743 }
 0x4c2   : > { %1751 = vpow2.f32 %v747_v21  ;;  %v964_v25 = vsel %vm691_vm2, %v959_v23, 0  ;;  %v746_v26 = vsub.f32 %v735_v16, %v744_v24 }
 0x4c3   : > { %1604 = vmatpush3.bf16.xpose.msra.mxu0 %v964_v25 }
 0x4c4   : > { %v749_v27 = vmul.f32 1.442695, %v746_v26  ;;  %1615 = vmatprep.subr.bf16.mxu0 %v1971_v0 }
 0x4c5   : > { %v763_v28 = vpop.permute.xlu1 %762 }
 0x4c6   : > { %1753 = vpow2.f32 %v749_v27  ;;  %1586 = vmatpush3.bf16.msra.mxu1 %v763_v28 }
 0x4c7   : > { %1591 = vmatprep.subr.bf16.mxu1 %v1971_v0 }
 0x4cf   : > { %v1752_v29 = vpop.eup %1751 }
 0x4d0   : > { %v751_v30 = vsel %vm691_vm2, %v1752_v29, 0.0 }
 0x4d1   : > { %752 = vadd.xlane.f32.xlu1 %v751_v30 }
 0x4d3   : > { %v1754_v31 = vpop.eup %1753 }
 0x4d4   : > { %v754_v32 = vsel %vm691_vm2, %v1754_v31, 0.0 }
 0x4d5   : > { %755 = vadd.xlane.f32.xlu1 %v754_v32 }
 0x4e6   : > { %822 = vrot.lane.b32.xlu1 %v2244_v10, %s1977_s23 }
 0x4ea   : > { %820 = vrot.lane.b32.xlu1 %v2244_v10, %s1978_s17 }
 0x4ee   : > { %956 = vrot.lane.b32.xlu1 %v2244_v10, %s1979_s20 }
 0x4f2   : > { %1092 = vrot.lane.b32.xlu1 %v2271_v38, %s1975_s16  ;;  %s2340_s16 = scalar_lea.hbm %s2395_s8, %s1501_s22 }
 0x4f6   : > { %1090 = vrot.lane.b32.xlu1 %v2271_v38, %s1974_s21 }
 0x55a   : > { %v753_v22 = vpop.xlane.xlu1 %752 }
 0x55b   : > { %1755 = vrcp.f32 %v753_v22 }
 0x55e   : > { %v756_v39 = vpop.xlane.xlu1 %755 }
 0x55f   : > { %1757 = vrcp.f32 %v756_v39 }
 0x562   : > { %v823_v40 = vpop.permute.xlu1 %822 }
 0x563   : > { %v828_v50 = vsel %vm691_vm2, %v823_v40, 0 }
 0x566   : > { %v821_v41 = vpop.permute.xlu1 %820 }
 0x568   : > { %v1756_v42 = vpop.eup %1755 }
 0x569   : > { %v759_v45 = vmul.f32 %v1756_v42, %v1752_v29 }
 0x56a   : > { %v957_v43 = vpop.permute.xlu1 %956 }
 0x56b   : > { %1606 = vmatmul.mubr.msk.bf16.vlgmr.msra.gmra.mxu0 %vm691_vm2, %v957_v43 }
 0x56c   : > { %v1758_v44 = vpop.eup %1757  ;;  %1617 = vmatprep.mubr.msk.bf16.mxu0 %vm1972_vm0, %v1971_v0 }
 0x56d   : > { %v760_v46 = vmul.f32 %v1758_v44, %v1754_v31 }
 0x56e   : > { %v1093_v47 = vpop.permute.xlu1 %1092 }
 0x56f   : > { %v1098_v48 = vsel %vm691_vm2, %v1093_v47, 0  ;;  %v761_v49 = vpack.c.bf16 %v760_v46, %v759_v45 }
 0x570   : > { %1616 = vmatpush3.bf16.xpose.msra.mxu0 %v1098_v48 }
 0x571   : > { %1588 = vmatmul.mubr.msk.bf16.vlgmr.msra.gmra.mxu1 %vm691_vm2, %v761_v49  ;;  %1627 = vmatprep.subr.bf16.mxu0 %v1971_v0 }
 0x572   : > { %1592 = vmatpush3.bf16.xpose.msra.mxu1 %v828_v50  ;;  %1593 = vmatprep.mubr.msk.bf16.mxu1 %vm1972_vm0, %v1971_v0  ;;  %v1091_v51 = vpop.permute.xlu1 %1090 }
 0x573   : > { %1597 = vmatprep.subr.bf16.mxu1 %v1971_v0 }
 0x577   : > { %1618 = vmatmul.mubr.msk.bf16.vlgmr.msra.gmra.mxu0 %vm691_vm2, %v1091_v51 }
 0x578   : > { %1635 = vmatprep.mubr.msk.bf16.mxu0 %vm1972_vm0, %v1971_v0 }
 0x579   : > { %1594 = vmatmul.mubr.msk.bf16.vlgmr.msra.gmra.mxu1 %vm691_vm2, %v821_v41 }
 0x57a   : > { %1599 = vmatprep.mubr.msk.bf16.mxu1 %vm1972_vm0, %v1971_v0 }
 0x62b   : > { %v1000_v52 = vpop.f32.mrf.mxu0 }
 0x62c   : > { %v1007_v9 = vsel %vm691_vm2, %v1000_v52, -inf }
 0x62d   : > { %v1607_v53 = vpop.f32.mrf.mxu0 }
 0x62f   : > { %v1003_v54 = vpop.f32.mrf.mxu0 }
 0x630   : > { %v1010_v14 = vsel %vm691_vm2, %v1003_v54, -inf }
 0x631   : > { %v802_v55 = vpop.f32.mrf.mxu1  ;;  %v1608_v56 = vpop.f32.mrf.mxu0 }
 0x632   : > { %v1493_v57 = vpack.c.bf16 %v802_v55, %v802_v55 }
 0x633   : > { %v1589_v58 = vpop.f32.mrf.mxu1 }
 0x634   : > { %818 = vst.msk [vmem:[#allocation2] sm:$0xf] %vm817_vm3, %v1493_v57 }
 0x635   : > { %v805_v59 = vpop.f32.mrf.mxu1 }
 0x636   : > { %v1494_v60 = vpack.c.bf16 %v805_v59, %v805_v59 }
 0x637   : > { %v1590_v61 = vpop.f32.mrf.mxu1  ;;  %v1134_v62 = vpop.f32.mrf.mxu0 }
 0x638   : > { %819 = vst.msk [vmem:[#allocation2 + $0x4] sm:$0xf] %vm817_vm3, %v1494_v60  ;;  %v1141_v13 = vsel %vm691_vm2, %v1134_v62, -inf }
 0x639   : > { %v864_v63 = vpop.f32.mrf.mxu1  ;;  %v1619_v1 = vpop.f32.mrf.mxu0 }
 0x63a   : > { %v871_v2 = vsel %vm691_vm2, %v864_v63, -inf }
 0x63b   : > { %v1137_v3 = vpop.f32.mrf.mxu0  ;;  %872 = vmax.xlane.f32.xlu1 %v871_v2  ;;  %v1595_v4 = vpop.f32.mrf.mxu1 }
 0x63c   : > { %v1144_v15 = vsel %vm691_vm2, %v1137_v3, -inf }
 0x63d   : > { %v867_v7 = vpop.f32.mrf.mxu1  ;;  %v1620_v8 = vpop.f32.mrf.mxu0 }
 0x63e   : > { %v874_v11 = vsel %vm691_vm2, %v867_v7, -inf }
 0x63f   : > { %1008 = vmax.xlane.f32.xlu1 %v1007_v9  ;;  %875 = vmax.xlane.f32.xlu0 %v874_v11  ;;  %v1596_v12 = vpop.f32.mrf.mxu1  ;;  %v1744_v11 = vld [vmem:[#allocation9 + $0x18] sm:$0xff]  }
 0x640   : > { %1628 = vmatpush3.bf16.msra.mxu0 %v1744_v11 }
 0x641   : > { %1629 = vmatprep.subr.bf16.mxu0 %v1971_v0 }
 0x643   : > { %1142 = vmax.xlane.f32.xlu1 %v1141_v13  ;;  %1011 = vmax.xlane.f32.xlu0 %v1010_v14 }
 0x647   : > { %1145 = vmax.xlane.f32.xlu0 %v1144_v15  ;;  %v1745_v15 = vld [vmem:[#allocation9 + $0x10] sm:$0xff]  }
 0x648   : > { %1630 = vmatpush3.bf16.msra.mxu0 %v1745_v15 }
 0x649   : > { %1631 = vmatprep.subr.bf16.mxu0 %v1971_v0 }
 0x6c4   : > { %v873_v16 = vpop.xlane.xlu1 %872 }
 0x6c5   : > { %v877_v17 = vsub.f32 %v864_v63, %v873_v16 }
 0x6c7   : > { %v879_v18 = vmul.f32 1.442695, %v877_v17 }
 0x6c8   : > { %v1009_v19 = vpop.xlane.xlu1 %1008  ;;  %v876_v20 = vpop.xlane.xlu0 %875 }
 0x6c9   : > { %1759 = vpow2.f32 %v879_v18  ;;  %v1013_v21 = vsub.f32 %v1000_v52, %v1009_v19  ;;  %v878_v23 = vsub.f32 %v867_v7, %v876_v20  ;;  %v1746_v19 = vld [vmem:[#allocation9 + $0x8] sm:$0xff]  }
 0x6ca   : > { %1632 = vmatpush3.bf16.msra.mxu0 %v1746_v19 }
 0x6cb   : > { %v1015_v24 = vmul.f32 1.442695, %v1013_v21  ;;  %v881_v25 = vmul.f32 1.442695, %v878_v23  ;;  %v1747_v21 = vld [vmem:[#allocation9] sm:$0xff]   ;;  %1633 = vmatprep.subr.bf16.mxu0 %v1971_v0 }
 0x6cc   : > { %v1143_v26 = vpop.xlane.xlu1 %1142  ;;  %v1012_v27 = vpop.xlane.xlu0 %1011 }
 0x6cd   : > { %1761 = vpow2.f32 %v1015_v24  ;;  %v1147_v28 = vsub.f32 %v1134_v62, %v1143_v26  ;;  %v1014_v29 = vsub.f32 %v1003_v54, %v1012_v27 }
 0x6ce   : > { %1763 = vpow2.f32 %v881_v25  ;;  %1634 = vmatpush3.bf16.msra.mxu0 %v1747_v21 }
 0x6cf   : > { %v1149_v30 = vmul.f32 1.442695, %v1147_v28  ;;  %v1017_v31 = vmul.f32 1.442695, %v1014_v29 }
 0x6d0   : > { %v1146_v32 = vpop.xlane.xlu0 %1145 }
 0x6d1   : > { %1765 = vpow2.f32 %v1149_v30  ;;  %v1148_v33 = vsub.f32 %v1137_v3, %v1146_v32 }
 0x6d2   : > { %1767 = vpow2.f32 %v1017_v31 }
 0x6d3   : > { %v1151_v34 = vmul.f32 1.442695, %v1148_v33 }
 0x6d5   : > { %1769 = vpow2.f32 %v1151_v34 }
 0x6d6   : > { %v1760_v35 = vpop.eup %1759 }
 0x6d7   : > { %v883_v36 = vsel %vm691_vm2, %v1760_v35, 0.0 }
 0x6d8   : > { %884 = vadd.xlane.f32.xlu1 %v883_v36 }
 0x6da   : > { %v1762_v37 = vpop.eup %1761 }
 0x6db   : > { %v1764_v22 = vpop.eup %1763  ;;  %v1019_v39 = vsel %vm691_vm2, %v1762_v37, 0.0 }
 0x6dc   : > { %1020 = vadd.xlane.f32.xlu1 %v1019_v39  ;;  %v886_v40 = vsel %vm691_vm2, %v1764_v22, 0.0 }
 0x6dd   : > { %887 = vadd.xlane.f32.xlu0 %v886_v40 }
 0x6de   : > { %v1766_v41 = vpop.eup %1765 }
 0x6df   : > { %v1768_v42 = vpop.eup %1767  ;;  %v1153_v43 = vsel %vm691_vm2, %v1766_v41, 0.0 }
 0x6e0   : > { %1154 = vadd.xlane.f32.xlu1 %v1153_v43  ;;  %v1022_v44 = vsel %vm691_vm2, %v1768_v42, 0.0 }
 0x6e1   : > { %1023 = vadd.xlane.f32.xlu0 %v1022_v44 }
 0x6e2   : > { %v1770_v45 = vpop.eup %1769 }
 0x6e3   : > { %v1156_v46 = vsel %vm691_vm2, %v1770_v45, 0.0 }
 0x6e5   : > { %1157 = vadd.xlane.f32.xlu0 %v1156_v46 }
 0x6f1   : > { %894 = vrot.lane.b32.xlu1 %v2244_v10, %s1980_s26 }
 0x6fb   : > { %1164 = vrot.lane.b32.xlu0 %v2271_v38, %s1978_s17 }
 0x761   : > { %v885_v47 = vpop.xlane.xlu1 %884 }
 0x762   : > { %1771 = vrcp.f32 %v885_v47 }
 0x765   : > { %v1021_v48 = vpop.xlane.xlu1 %1020 }
 0x766   : > { %v888_v49 = vpop.xlane.xlu0 %887 }
 0x767   : > { %1773 = vrcp.f32 %v888_v49 }
 0x769   : > { %v1155_v50 = vpop.xlane.xlu1 %1154 }
 0x76a   : > { %v1024_v51 = vpop.xlane.xlu0 %1023 }
 0x76b   : > { %1775 = vrcp.f32 %v1024_v51 }
 0x76c   : > { %1777 = vrcp.f32 %v1021_v48 }
 0x76d   : > { %v895_v52 = vpop.permute.xlu1 %894 }
 0x76e   : > { %1598 = vmatpush3.bf16.msra.mxu1 %v895_v52  ;;  %v1158_v53 = vpop.xlane.xlu0 %1157 }
 0x76f   : > { %1609 = vmatprep.subr.bf16.mxu1 %v1971_v0  ;;  %v1772_v54 = vpop.eup %1771  ;;  %1779 = vrcp.f32 %v1158_v53 }
 0x770   : > { %1781 = vrcp.f32 %v1155_v50  ;;  %v891_v55 = vmul.f32 %v1772_v54, %v1760_v35 }
 0x772   : > { %v1165_v1 = vpop.permute.xlu0 %1164 }
 0x774   : > { %v1774_v10 = vpop.eup %1773 }
 0x775   : > { %v892_v56 = vmul.f32 %v1774_v10, %v1764_v22 }
 0x777   : > { %v893_v57 = vpack.c.bf16 %v892_v56, %v891_v55 }
 0x778   : > { %v1776_v58 = vpop.eup %1775 }
 0x779   : > { %1600 = vmatmul.mubr.msk.bf16.vlgmr.msra.gmra.mxu1 %vm691_vm2, %v893_v57  ;;  %v1778_v59 = vpop.eup %1777  ;;  %v1028_v60 = vmul.f32 %v1776_v58, %v1768_v42 }
 0x77a   : > { %1610 = vmatpush3.bf16.msra.mxu1 %v2271_v38  ;;  %1611 = vmatprep.mubr.msk.bf16.mxu1 %vm1972_vm0, %v1971_v0  ;;  %v1027_v61 = vmul.f32 %v1778_v59, %v1762_v37  ;;  %v1480_v37 = vld [vmem:[%s2394_s7] ss:$0 sm:$0xff] }
 0x77b   : > { %1621 = vmatprep.subr.bf16.mxu1 %v1971_v0 }
 0x77c   : > { %v1029_v62 = vpack.c.bf16 %v1028_v60, %v1027_v61  ;;  %v1780_v63 = vpop.eup %1779 }
 0x77d   : > { %v1782_v2 = vpop.eup %1781  ;;  %v1162_v3 = vmul.f32 %v1780_v63, %v1770_v45 }
 0x77e   : > { %v1161_v4 = vmul.f32 %v1782_v2, %v1766_v41 }
 0x780   : > { %v1163_v38 = vpack.c.bf16 %v1162_v3, %v1161_v4 }
 0x781   : > { %1612 = vmatmul.mubr.msk.bf16.vlgmr.msra.gmra.mxu1 %vm691_vm2, %v1029_v62 }
 0x782   : > { %1622 = vmatpush3.bf16.msra.mxu1 %v1165_v1  ;;  %1623 = vmatprep.mubr.msk.bf16.mxu1 %vm1972_vm0, %v1971_v0 }
 0x789   : > { %1624 = vmatmul.mubr.msk.bf16.vlgmr.msra.gmra.mxu1 %vm691_vm2, %v1163_v38 }
 0x839   : > { %v934_v7 = vpop.f32.mrf.mxu1 }
 0x83a   : > { %v1495_v8 = vpack.c.bf16 %v934_v7, %v934_v7 }
 0x83b   : > { %v1601_v9 = vpop.f32.mrf.mxu1 }
 0x83c   : > { %947 = vrot.lane.b32.xlu1 %v1495_v8, %s1976_s15 }
 0x83d   : > { %v937_v12 = vpop.f32.mrf.mxu1 }
 0x83e   : > { %v1496_v13 = vpack.c.bf16 %v937_v12, %v937_v12 }
 0x83f   : > { %v1602_v14 = vpop.f32.mrf.mxu1 }
 0x840   : > { %949 = vrot.lane.b32.xlu1 %v1496_v13, %s1976_s15  ;;  %s1981_s15 = smov [#allocation11]  }
 0x841   : > { %v1067_v16 = vpop.f32.mrf.mxu1  ;;  %s1893_s23 = sshll.u32 %s1981_s15, 4  ;;  %s1894_s23 = int_to_ptr.vmem [resolvable:$false] %s1893_s23 }
 0x842   : > { %v1497_v17 = vpack.c.bf16 %v1067_v16, %v1067_v16  ;;  %s1895_s17 = scalar_lea.vmem %s1894_s23, 512  ;;  %p1896_p13 = scmp.lt.s32.totalorder %s2342_s25, %s1894_s23 }
 0x843   : > { %v1613_v18 = vpop.f32.mrf.mxu1  ;;  %p1897_p0 = scmp.lt.s32.totalorder %s1895_s17, %s1889_s4 }
 0x844   : > { %1080 = vrot.lane.b32.xlu0 %v1497_v17, %s1979_s20 }
 0x845   : > { %v1070_v20 = vpop.f32.mrf.mxu1  ;;  %p1898_p2 = por %p1897_p0, %p1896_p13 }
 0x846   : > { %v1498_v23 = vpack.c.bf16 %v1070_v20, %v1070_v20 }
 0x847   : > { %v1614_v24 = vpop.f32.mrf.mxu1  ;;  %p1899_p10 = pnand %p1898_p2, %p1892_p9 }
 0x848   : > { %1082 = vrot.lane.b32.xlu1 %v1498_v23, %s1979_s20 }
 0x849   : > { %v1204_v25 = vpop.f32.mrf.mxu1 }
 0x84a   : > { %v1499_v26 = vpack.c.bf16 %v1204_v25, %v1204_v25 }
 0x84b   : > { %v1625_v27 = vpop.f32.mrf.mxu1 }
 0x84c   : > { %1217 = vrot.lane.b32.xlu0 %v1499_v26, %s1980_s26 }
 0x84d   : > { %v1207_v28 = vpop.f32.mrf.mxu1 }
 0x84e   : > { %v1500_v29 = vpack.c.bf16 %v1207_v28, %v1207_v28 }
 0x84f   : > { %v1626_v30 = vpop.f32.mrf.mxu1 }
 0x850   : > { %1219 = vrot.lane.b32.xlu1 %v1500_v29, %s1980_s26 }
 0x8ae   : > { %v948_v31 = vpop.permute.xlu1 %947 }
 0x8af   : > { %954 = vst.msk [vmem:[#allocation2] sm:$0xf] %vm953_vm4, %v948_v31 }
 0x8b2   : > { %v950_v32 = vpop.permute.xlu1 %949 }
 0x8b3   : > { %955 = vst.msk [vmem:[#allocation2 + $0x4] sm:$0xf] %vm953_vm4, %v950_v32 }
 0x8b6   : > { %v1081_v0 = vpop.permute.xlu0 %1080 }
 0x8b7   : > { %1087 = vst.msk [vmem:[#allocation2] sm:$0xf] %vm1086_vm5, %v1081_v0 }
 0x8ba   : > { %v1083_v33 = vpop.permute.xlu1 %1082 }
 0x8bb   : > { %1088 = vst.msk [vmem:[#allocation2 + $0x4] sm:$0xf] %vm1086_vm5, %v1083_v33 }
 0x8be   : > { %v1218_v34 = vpop.permute.xlu0 %1217 }
 0x8bf   : > { %1224 = vst.msk [vmem:[#allocation2] sm:$0xf] %vm1223_vm6, %v1218_v34 }
 0x8c2   : > { %v1220_v35 = vpop.permute.xlu1 %1219 }
 0x8c3   : > { %1225 = vst.msk [vmem:[#allocation2 + $0x4] sm:$0xf] %vm1223_vm6, %v1220_v35 }
 0x8ca   : > { %v1748_v36 = vld [vmem:[#allocation2] sm:$0xff]  }
 0x8cb   : > { %1636 = vmatmul.mubr.msk.bf16.vlgmr.msra.gmra.mxu0 %vm371_vm1, %v1748_v36 }
 0x98b   : > { %v1309_v22 = vpop.f32.mrf.mxu0 }
 0x98c   : > { %v1310_v39 = vadd.f32 %v1480_v37, %v1309_v22 }
 0x98d   : > { %v1637_v40 = vpop.f32.mrf.mxu0 }
 0x98e   : > { %v1316_v41 = vadd.f32 %v1310_v39, %v2198_v5 }
 0x98f   : > { %v1312_v42 = vpop.f32.mrf.mxu0 }
 0x990   : > { %1318 = vst.msk [vmem:[%s367_s19] sm:$0xff] %vm371_vm1, %v1316_v41  ;;  %v1313_v43 = vadd.f32 %v1480_v37, %v1312_v42 }
 0x991   : > { %v1638_v44 = vpop.f32.mrf.mxu0 }
 0x992   : > { %v1317_v5 = vadd.f32 %v1313_v43, %v2201_v6 }
 0x994   : > { %1319 = vst.msk [vmem:[%s367_s19 + $0x8] sm:$0xff] %vm371_vm1, %v1317_v5 }
 0x995   : > { %1902 = shalt.err (!%p1899_p10)
}
 0x996   : > { %s1903_s20 = scalar_lea.hbm %s2340_s16, 256  ;;  %s1907_s13 = scalar_lea.hbm %s2395_s8, 512 }
 0x997   : > { %p1904_p6 = scmp.ne.s32.totalorder %s2340_s16, %s1903_s20  ;;  %p1908_p3 = scmp.lt.s32.totalorder %s2340_s16, %s2395_s8 }
 0x998   : > { %p1909_p11 = scmp.lt.s32.totalorder %s1907_s13, %s1903_s20 }
 0x999   : > { %p1905_p4 = pnand %p1904_p6, %p2420_p1 }
 0x99a   : > { %p1910_p5 = por %p1909_p11, %p1908_p3 }
 0x99b   : > { %p1906_p8 = pneg %p1905_p4 }
 0x99d   : > { %p1911_p7 = pnand %p1910_p5, %p1906_p8 }
 0x99f   : > { %1914 = shalt.err (!%p1911_p7)
}
 0x9a0   : > { %s1982_s18 = smov 128   ;;  %s1983_s21 = smov 8  }
 0x9a1   : > { %1653 = dma.vmem_to_hbm [thread:$0]  (%p2420_p1), %s2342_s25, 256, %s2340_s16, %s1321_s9, %s1982_s18, %s1982_s18, %s1983_s21  }
 0x9a2 PF: > { %s1349_s4 = sand.u32 1, %s1949_s27   ;;  %p2421_p12 = scmp.ne.s32.totalorder %s2405_s12, 0 }
 0x9a3   : > { %p2422_p9 = scmp.ge.s32.totalorder %s1961_s30, 2  ;;  %s1350_s15 = scalar_lea.sflag [#allocation5], %s1349_s4 }
 0x9a5   : > { %p1670_p13 = pnand %p2422_p9, %p2421_p12 }
 0x9a7   : > { %p1671_p0 = pneg %p1670_p13 }
 0x9a9   : > { %1944 = dma.done.wait (%p1671_p0), %s1350_s15, 256  }
 0x9aa   : > { %1946 = vsyncadd (%p1671_p0), %s1350_s15, 4294967040  ;;  %p23_p2 = scmp.ge.s32.totalorder %s2115_s24, 4   ;;  %s2423_s27 = smov %s1953_s28 }
 0x9ab   : > { %s2424_s28 = smov %s1957_s29  ;;  %s2425_s29 = smov %s2125_s10 }
 0x9ac   : > { %s2426_s30 = smov %s2115_s24  ;;  %25 = sbr.rel (!%p23_p2) target bundleno = 10 (0xa), region = 109 }
 0x9b1   :  { %1355 = vsyncpa [#allocation4], 1 }
 0x9b2   :  { %1357 = vsyncpa [#allocation4 + $0x1], 1 }
 0x9b3   :  { %1358 = vsyncpa [#allocation7], 1 }
 0x9b4   :  { %1359 = vsyncpa [#allocation10], 1 }
 0x9b5   :  { %1360 = vsyncpa [#allocation5], 1 }
 0x9b6   :  { %1362 = vsyncpa [#allocation5 + $0x1], 1 }

</bundles_post_ra>
